<compile_context>
chip_gen: v7x
topology: tpu7x:2x2x1
jax: 0.10.0
libtpu: 0.0.40
codegen_flags: <defaults>
</compile_context>

<pallas_src>
import functools

import jax
import jax.numpy as jnp
from jax.experimental import pallas as pl
from jax.experimental.pallas import tpu as pltpu


# ------------------------------- kernel -------------------------------------

def _mlp_kernel(x_ref, w1_ref, b1_ref, w2_ref, b2_ref, w3_ref, b3_ref,
                o_ref, h1_ref, h2_ref):
    # x arrives f32, cast to bf16 in-kernel; matmuls are bf16 x bf16 with f32
    # accumulation; bias-add/ReLU run in f32 on the VPU; h1/h2 are staged
    # through bf16 VMEM scratch (bias+ReLU+downcast fused into the store).
    x = x_ref[...].astype(jnp.bfloat16)

    h1 = jnp.dot(x, w1_ref[...], preferred_element_type=jnp.float32)
    h1_ref[...] = jnp.maximum(h1 + b1_ref[...], 0.0).astype(jnp.bfloat16)  # dropout = id (eval)

    h2 = jnp.dot(h1_ref[...], w2_ref[...], preferred_element_type=jnp.float32)
    h2_ref[...] = jnp.maximum(h2 + b2_ref[...], 0.0).astype(jnp.bfloat16)  # dropout = id (eval)

    out = jnp.dot(h2_ref[...], w3_ref[...], preferred_element_type=jnp.float32)
    o_ref[...] = (out + b3_ref[...]).astype(o_ref.dtype)


# ------------------------------ helpers -------------------------------------

def _round_up(x, m):
    return (x + m - 1) // m * m


def _pad_to(a, shape):
    return jnp.pad(a, [(0, t - s) for s, t in zip(a.shape, shape)])


def _resident_spec(shape):
    # Constant block index across the grid + single buffer -> one VMEM copy
    # of each weight stays resident for the whole grid.
    return pl.BlockSpec(shape, lambda i: (0, 0), pipeline_mode=pl.Buffered(1))


def _device_kind():
    try:
        return jax.devices()[0].device_kind.lower()
    except Exception:  # pragma: no cover - defensive
        return ""


def _lane_align(kind):
    # v6e/v7x MXU tiles are 2x256x256 -> pad K/N to 256; v5e (4x128x128) and
    # unknown chips stay at 128 to avoid wasted FLOPs.
    return 256 if ("v6" in kind or "v7" in kind) else 128


def _vmem_cap_bytes(kind):
    # v7x: 64 MiB physical VMEM per TensorCore -> leave headroom for Mosaic
    # scratch/pipelining. v5e/v6e: 128 MiB physical -> allow up to ~100 MiB.
    return (56 << 20) if "v7" in kind else (100 << 20)


_BT_CANDIDATES = (512, 256, 128, 64, 32, 16)


def _pick_bt(B, batch_tile):
    # Multiples of 16 (bf16 packs 16 rows/vreg); aim for >=4 grid steps when B
    # permits (>=2 per v7x TensorCore); minimise padded rows, prefer big tiles.
    target = min(int(batch_tile), max(16, _round_up(-(-B // 4), 16)))
    cands = [c for c in _BT_CANDIDATES if c <= target] or [16]
    return min(cands, key=lambda c: (_round_up(B, c) - B, -c))


# ------------------------------ forward -------------------------------------

def _mlp_forward(x, w1p, b1p, w2p, b2p, w3p, b3p, *,
                 batch_tile, d_out_true, out_dtype, vmem_cap):
    """x: (B, D_in) f32. Padded/bf16 params. Returns (B, d_out_true) out_dtype."""
    B, D_in = x.shape
    D_in_p, H1_p = w1p.shape
    H2_p = w2p.shape[1]
    D_out_p = w3p.shape[1]

    bt = _pick_bt(B, batch_tile)
    B_p = _round_up(B, bt)
    grid = (B_p // bt,)

    # Zero padding is exact: padded x cols hit zero W rows; padded hidden cols
    # stay 0 through ReLU and multiply zero rows of the next weight.
    xp = x.astype(jnp.float32)
    if (B_p, D_in_p) != (B, D_in):
        xp = jnp.pad(xp, ((0, B_p - B), (0, D_in_p - D_in)))

    out_size = jnp.dtype(out_dtype).itemsize
    w_bytes = (w1p.size + w2p.size + w3p.size) * 2
    b_bytes = (b1p.size + b2p.size + b3p.size) * 4
    io_bytes = 2 * bt * (D_in_p * 4 + D_out_p * out_size)     # double-buffered x / out tiles
    scratch_bytes = bt * (H1_p + H2_p) * 2                     # bf16 h1/h2 scratch
    vmem_need = w_bytes + b_bytes + io_bytes + scratch_bytes
    if vmem_need > int(0.7 * vmem_cap):
        # TODO(synk): fall back to a 2-D grid that tiles W2/W3 over N (and K via
        # an f32 VMEM accumulator + pl.when init/finalize) when the weights do
        # not fit VMEM-resident on this chip (notably v7x's 64 MiB).
        raise NotImplementedError(
            f"resident-weight footprint {vmem_need/2**20:.1f} MiB exceeds VMEM "
            f"budget {vmem_cap/2**20:.0f} MiB; tiled-weight fallback not implemented")
    vmem_limit = int(min(vmem_cap, max(2 * vmem_need, 32 << 20)))

    flops = 2 * B_p * (D_in_p * H1_p + H1_p * H2_p + H2_p * D_out_p)
    bytes_accessed = xp.size * 4 + w_bytes + b_bytes + B_p * D_out_p * out_size

    out_p = pl.pallas_call(
        _mlp_kernel,
        out_shape=jax.ShapeDtypeStruct((B_p, D_out_p), out_dtype),
        grid_spec=pltpu.PrefetchScalarGridSpec(
            num_scalar_prefetch=0,
            grid=grid,
            in_specs=[
                pl.BlockSpec((bt, D_in_p), lambda i: (i, 0)),   # x tile (double-buffered)
                _resident_spec((D_in_p, H1_p)),                 # W1
                _resident_spec((1, H1_p)),                      # b1
                _resident_spec((H1_p, H2_p)),                   # W2
                _resident_spec((1, H2_p)),                      # b2
                _resident_spec((H2_p, D_out_p)),                # W3
                _resident_spec((1, D_out_p)),                   # b3
            ],
            out_specs=pl.BlockSpec((bt, D_out_p), lambda i: (i, 0)),
            scratch_shapes=[
                pltpu.VMEM((bt, H1_p), jnp.bfloat16),           # h1 staging
                pltpu.VMEM((bt, H2_p), jnp.bfloat16),           # h2 staging
            ],
        ),
        compiler_params=pltpu.CompilerParams(
            dimension_semantics=("parallel",),
            vmem_limit_bytes=vmem_limit,
        ),
        cost_estimate=pl.CostEstimate(
            flops=flops, transcendentals=0, bytes_accessed=bytes_accessed),
    )(xp, w1p, b1p, w2p, b2p, w3p, b3p)

    return out_p[:B, :d_out_true]


class ThreeLayerMLPPallas:
    """Pallas port of ThreeLayerMLP (eval mode). Weights pre-padded/cast once."""

    def __init__(self, w1, b1, w2, b2, w3, b3, *, batch_tile=512,
                 out_dtype=jnp.float32):
        kind = _device_kind()
        lane = _lane_align(kind)
        vmem_cap = _vmem_cap_bytes(kind)

        D_in, H1 = w1.shape
        H2 = w2.shape[1]
        D_out = w3.shape[1]
        D_in_p, H1_p, H2_p, D_out_p = (_round_up(d, lane)
                                       for d in (D_in, H1, H2, D_out))

        # One-time pad + cast (a single HBM pass at construction, not per call).
        self._params = (
            _pad_to(w1, (D_in_p, H1_p)).astype(jnp.bfloat16),
            _pad_to(b1.reshape(1, -1), (1, H1_p)).astype(jnp.float32),
            _pad_to(w2, (H1_p, H2_p)).astype(jnp.bfloat16),
            _pad_to(b2.reshape(1, -1), (1, H2_p)).astype(jnp.float32),
            _pad_to(w3, (H2_p, D_out_p)).astype(jnp.bfloat16),
            _pad_to(b3.reshape(1, -1), (1, D_out_p)).astype(jnp.float32),
        )
        self._fwd = jax.jit(functools.partial(
            _mlp_forward, batch_tile=int(batch_tile), d_out_true=int(D_out),
            out_dtype=out_dtype, vmem_cap=int(vmem_cap)))

    def __call__(self, x):
        return self._fwd(x, *self._params)


# ------------------------------ test harness --------------------------------

def _init_linear(key, fan_in, fan_out):
    """Mimics nn.Linear's U(-1/sqrt(fan_in), 1/sqrt(fan_in)); W as (in, out)."""
    kw, kb = jax.random.split(key)
    bound = 1.0 / jnp.sqrt(fan_in)
    w = jax.random.uniform(kw, (fan_in, fan_out), jnp.float32, -bound, bound)
    b = jax.random.uniform(kb, (fan_out,), jnp.float32, -bound, bound)
    return w, b


def _reference(x, w1, b1, w2, b2, w3, b3):
    """Pure-JAX reference replicating the kernel's bf16-operand / f32-acc math."""
    bf = lambda a: a.astype(jnp.bfloat16).astype(jnp.float32)
    h1 = jnp.maximum(bf(x) @ bf(w1) + b1, 0.0)
    h2 = jnp.maximum(bf(h1) @ bf(w2) + b2, 0.0)
    return bf(h2) @ bf(w3) + b3


if __name__ == "__main__":
    keys = jax.random.split(jax.random.PRNGKey(0), 8)

    # Small shapes consistent with the module's (D_in, H1, H2, D_out) signature.
    B, D_in, H1, H2, D_out = 8, 32, 64, 32, 16
    x = jax.random.normal(keys[0], (B, D_in), jnp.float32)
    w1, b1 = _init_linear(keys[1], D_in, H1)
    w2, b2 = _init_linear(keys[2], H1, H2)
    w3, b3 = _init_linear(keys[3], H2, D_out)

    mlp = ThreeLayerMLPPallas(w1, b1, w2, b2, w3, b3)
    out = jax.block_until_ready(mlp(x))
    ref = _reference(x, w1, b1, w2, b2, w3, b3)
    assert out.shape == (B, D_out)
    assert jnp.allclose(out, ref, atol=1e-2, rtol=1e-2), "small-shape mismatch vs reference"

    # Larger lane-dense case: exercises multi-step batch grid (megacore path).
    B2, D2, H1b, H2b, Do2 = 512, 256, 512, 256, 128
    x2 = jax.random.normal(keys[4], (B2, D2), jnp.float32)
    w1b, b1b = _init_linear(keys[5], D2, H1b)
    w2b, b2b = _init_linear(keys[6], H1b, H2b)
    w3b, b3b = _init_linear(keys[7], H2b, Do2)

    mlp2 = ThreeLayerMLPPallas(w1b, b1b, w2b, b2b, w3b, b3b)
    out2 = jax.block_until_ready(mlp2(x2))
    ref2 = _reference(x2, w1b, b1b, w2b, b2b, w3b, b3b)
    assert out2.shape == (B2, Do2)
    assert jnp.allclose(out2, ref2, atol=2e-2, rtol=2e-2), "large-shape mismatch vs reference"

    print("KERNEL_OK")
</pallas_src>

<mosaic_0001>
module attributes {stable_mosaic.version = 11 : i64} {
  func.func @_mlp_kernel(%arg0: i32, %arg1: memref<16x128xf32, #tpu.memory_space<vmem>>, %arg2: memref<128x128xbf16, #tpu.memory_space<vmem>>, %arg3: memref<1x128xf32, #tpu.memory_space<vmem>>, %arg4: memref<128x128xbf16, #tpu.memory_space<vmem>>, %arg5: memref<1x128xf32, #tpu.memory_space<vmem>>, %arg6: memref<128x128xbf16, #tpu.memory_space<vmem>>, %arg7: memref<1x128xf32, #tpu.memory_space<vmem>>, %arg8: memref<16x128xf32, #tpu.memory_space<vmem>>, %arg9: memref<16x128xbf16, #tpu.memory_space<vmem>>, %arg10: memref<16x128xbf16, #tpu.memory_space<vmem>>) attributes {dimension_semantics = [#tpu.dimension_semantics<parallel>], iteration_bounds = array<i64: 1>, scalar_prefetch = 0 : i64, scratch_operands = 2 : i64, tpu.core_type = #tpu.core_type<tc>, window_params = [{transform_indices = @transform_0, window_bounds = array<i64: 16, 128>}, {pipeline_mode = #tpu.pipeline_mode<synchronous>, transform_indices = @transform_1, window_bounds = array<i64: 128, 128>}, {pipeline_mode = #tpu.pipeline_mode<synchronous>, transform_indices = @transform_2, window_bounds = array<i64: 1, 128>}, {pipeline_mode = #tpu.pipeline_mode<synchronous>, transform_indices = @transform_3, window_bounds = array<i64: 128, 128>}, {pipeline_mode = #tpu.pipeline_mode<synchronous>, transform_indices = @transform_4, window_bounds = array<i64: 1, 128>}, {pipeline_mode = #tpu.pipeline_mode<synchronous>, transform_indices = @transform_5, window_bounds = array<i64: 128, 128>}, {pipeline_mode = #tpu.pipeline_mode<synchronous>, transform_indices = @transform_6, window_bounds = array<i64: 1, 128>}, {transform_indices = @transform_7, window_bounds = array<i64: 16, 128>}]} {
    %c0 = arith.constant 0 : index
    %c0_0 = arith.constant 0 : index
    %0 = vector.load %arg1[%c0, %c0_0] : memref<16x128xf32, #tpu.memory_space<vmem>>, vector<16x128xf32>
    %1 = arith.truncf %0 : vector<16x128xf32> to vector<16x128xbf16>
    %c0_1 = arith.constant 0 : index
    %c0_2 = arith.constant 0 : index
    %2 = vector.load %arg2[%c0_1, %c0_2] : memref<128x128xbf16, #tpu.memory_space<vmem>>, vector<128x128xbf16>
    %cst = arith.constant dense<0.000000e+00> : vector<16x128xf32>
    %3 = tpu.matmul %1, %2, %cst {dimension_numbers = #tpu.dot_dimension_numbers<[1], [0], [0], [1], [0, 0, 1, 1], [], []>} : vector<16x128xbf16>, vector<128x128xbf16>, vector<16x128xf32> -> vector<16x128xf32>
    %c0_3 = arith.constant 0 : index
    %c0_4 = arith.constant 0 : index
    %4 = vector.load %arg3[%c0_3, %c0_4] : memref<1x128xf32, #tpu.memory_space<vmem>>, vector<1x128xf32>
    %5 = vector.broadcast %4 : vector<1x128xf32> to vector<16x128xf32>
    %6 = arith.addf %3, %5 : vector<16x128xf32>
    %cst_5 = arith.constant 0.000000e+00 : f32
    %7 = vector.broadcast %cst_5 : f32 to vector<16x128xf32>
    %8 = arith.maximumf %6, %7 : vector<16x128xf32>
    %9 = arith.truncf %8 : vector<16x128xf32> to vector<16x128xbf16>
    %c0_6 = arith.constant 0 : index
    %c0_7 = arith.constant 0 : index
    %10 = vector.load %arg9[%c0_6, %c0_7] : memref<16x128xbf16, #tpu.memory_space<vmem>>, vector<16x128xbf16>
    tpu.vector_store %arg9[%c0_6, %c0_7], %9 {strides = array<i32>} : memref<16x128xbf16, #tpu.memory_space<vmem>>, vector<16x128xbf16>,
    %c0_8 = arith.constant 0 : index
    %c0_9 = arith.constant 0 : index
    %11 = vector.load %arg9[%c0_8, %c0_9] : memref<16x128xbf16, #tpu.memory_space<vmem>>, vector<16x128xbf16>
    %c0_10 = arith.constant 0 : index
    %c0_11 = arith.constant 0 : index
    %12 = vector.load %arg4[%c0_10, %c0_11] : memref<128x128xbf16, #tpu.memory_space<vmem>>, vector<128x128xbf16>
    %cst_12 = arith.constant dense<0.000000e+00> : vector<16x128xf32>
    %13 = tpu.matmul %11, %12, %cst_12 {dimension_numbers = #tpu.dot_dimension_numbers<[1], [0], [0], [1], [0, 0, 1, 1], [], []>} : vector<16x128xbf16>, vector<128x128xbf16>, vector<16x128xf32> -> vector<16x128xf32>
    %c0_13 = arith.constant 0 : index
    %c0_14 = arith.constant 0 : index
    %14 = vector.load %arg5[%c0_13, %c0_14] : memref<1x128xf32, #tpu.memory_space<vmem>>, vector<1x128xf32>
    %15 = vector.broadcast %14 : vector<1x128xf32> to vector<16x128xf32>
    %16 = arith.addf %13, %15 : vector<16x128xf32>
    %cst_15 = arith.constant 0.000000e+00 : f32
    %17 = vector.broadcast %cst_15 : f32 to vector<16x128xf32>
    %18 = arith.maximumf %16, %17 : vector<16x128xf32>
    %19 = arith.truncf %18 : vector<16x128xf32> to vector<16x128xbf16>
    %c0_16 = arith.constant 0 : index
    %c0_17 = arith.constant 0 : index
    %20 = vector.load %arg10[%c0_16, %c0_17] : memref<16x128xbf16, #tpu.memory_space<vmem>>, vector<16x128xbf16>
    tpu.vector_store %arg10[%c0_16, %c0_17], %19 {strides = array<i32>} : memref<16x128xbf16, #tpu.memory_space<vmem>>, vector<16x128xbf16>,
    %c0_18 = arith.constant 0 : index
    %c0_19 = arith.constant 0 : index
    %21 = vector.load %arg10[%c0_18, %c0_19] : memref<16x128xbf16, #tpu.memory_space<vmem>>, vector<16x128xbf16>
    %c0_20 = arith.constant 0 : index
    %c0_21 = arith.constant 0 : index
    %22 = vector.load %arg6[%c0_20, %c0_21] : memref<128x128xbf16, #tpu.memory_space<vmem>>, vector<128x128xbf16>
    %cst_22 = arith.constant dense<0.000000e+00> : vector<16x128xf32>
    %23 = tpu.matmul %21, %22, %cst_22 {dimension_numbers = #tpu.dot_dimension_numbers<[1], [0], [0], [1], [0, 0, 1, 1], [], []>} : vector<16x128xbf16>, vector<128x128xbf16>, vector<16x128xf32> -> vector<16x128xf32>
    %c0_23 = arith.constant 0 : index
    %c0_24 = arith.constant 0 : index
    %24 = vector.load %arg7[%c0_23, %c0_24] : memref<1x128xf32, #tpu.memory_space<vmem>>, vector<1x128xf32>
    %25 = vector.broadcast %24 : vector<1x128xf32> to vector<16x128xf32>
    %26 = arith.addf %23, %25 : vector<16x128xf32>
    %c0_25 = arith.constant 0 : index
    %c0_26 = arith.constant 0 : index
    %27 = vector.load %arg8[%c0_25, %c0_26] : memref<16x128xf32, #tpu.memory_space<vmem>>, vector<16x128xf32>
    tpu.vector_store %arg8[%c0_25, %c0_26], %26 {strides = array<i32>} : memref<16x128xf32, #tpu.memory_space<vmem>>, vector<16x128xf32>,
    return
  }
  func.func @transform_0(%arg0: i32) -> (i32, i32) {
    %c0_i32 = arith.constant 0 : i32
    %c0_i32_0 = arith.constant 0 : i32
    return %arg0, %c0_i32 : i32, i32
  }
  func.func @transform_1(%arg0: i32) -> (i32, i32) {
    %c0_i32 = arith.constant 0 : i32
    %c0_i32_0 = arith.constant 0 : i32
    %c0_i32_1 = arith.constant 0 : i32
    return %c0_i32, %c0_i32_0 : i32, i32
  }
  func.func @transform_2(%arg0: i32) -> (i32, i32) {
    %c0_i32 = arith.constant 0 : i32
    %c0_i32_0 = arith.constant 0 : i32
    %c0_i32_1 = arith.constant 0 : i32
    return %c0_i32, %c0_i32_0 : i32, i32
  }
  func.func @transform_3(%arg0: i32) -> (i32, i32) {
    %c0_i32 = arith.constant 0 : i32
    %c0_i32_0 = arith.constant 0 : i32
    %c0_i32_1 = arith.constant 0 : i32
    return %c0_i32, %c0_i32_0 : i32, i32
  }
  func.func @transform_4(%arg0: i32) -> (i32, i32) {
    %c0_i32 = arith.constant 0 : i32
    %c0_i32_0 = arith.constant 0 : i32
    %c0_i32_1 = arith.constant 0 : i32
    return %c0_i32, %c0_i32_0 : i32, i32
  }
  func.func @transform_5(%arg0: i32) -> (i32, i32) {
    %c0_i32 = arith.constant 0 : i32
    %c0_i32_0 = arith.constant 0 : i32
    %c0_i32_1 = arith.constant 0 : i32
    return %c0_i32, %c0_i32_0 : i32, i32
  }
  func.func @transform_6(%arg0: i32) -> (i32, i32) {
    %c0_i32 = arith.constant 0 : i32
    %c0_i32_0 = arith.constant 0 : i32
    %c0_i32_1 = arith.constant 0 : i32
    return %c0_i32, %c0_i32_0 : i32, i32
  }
  func.func @transform_7(%arg0: i32) -> (i32, i32) {
    %c0_i32 = arith.constant 0 : i32
    %c0_i32_0 = arith.constant 0 : i32
    return %arg0, %c0_i32 : i32, i32
  }
}

</mosaic_0001>

<bundles_post_ra>
// kernel: _mlp_forward.1
= control target key start
LH: loop header
LB: loop body
LE: loop exit
PB: predicated region body
PF: predicated region fallthrough
CT: control target
= control target key end

     0   :  { %12 = vsyncpa [#allocation5], 0  ;;  %s790_s0 = inlined_call_operand.vmem [shape: f32[16,128], index: 0, kind: input, shape index: {}]   ;;  %s791_s1 = inlined_call_operand.hbm [shape: bf16[128,128], index: 1, kind: input, shape index: {}]   ;;  %s792_s2 = inlined_call_operand.vmem [shape: f32[1,128], index: 2, kind: input, shape index: {}]   ;;  %s793_s3 = inlined_call_operand.hbm [shape: bf16[128,128], index: 3, kind: input, shape index: {}]   ;;  %s794_s4 = inlined_call_operand.vmem [shape: f32[1,128], index: 4, kind: input, shape index: {}]   ;;  %s795_s5 = inlined_call_operand.hbm [shape: bf16[128,128], index: 5, kind: input, shape index: {}]   ;;  %s796_s6 = inlined_call_operand.vmem [shape: f32[1,128], index: 6, kind: input, shape index: {}]   ;;  %s797_s7 = inlined_call_operand.vmem [shape: f32[16,128], index: 7, kind: output, shape index: {}]  }
   0x1   :  { %13 = vsyncpa [#allocation7], 0  ;;  %s640_s24 = smov [#allocation6]   ;;  %s641_s26 = smov [#allocation4]  }
   0x2   :  { %s35_s25 = sshll.u32 %s640_s24, 4  ;;  %s21_s27 = sshll.u32 %s641_s26, 4  ;;  %s36_s25 = int_to_ptr.vmem [resolvable:$true] %s35_s25  ;;  %s687_s27 = int_to_ptr.vmem [resolvable:$true] %s21_s27 }
   0x3   :  { %s570_s30 = scalar_lea.hbm %s793_s3, 1024 }
   0x4   :  { %p571_p0 = scmp.ne.s32.totalorder %s793_s3, %s570_s30  ;;  %p574_p1 = scmp.lt.u32.totalorder %s570_s30, %s793_s3 }
   0x6   :  { %p576_p2 = pnand %p574_p1, %p571_p0 }
   0x8   :  { %579 = shalt.err (!%p576_p2)
}
   0x9   :  { %s580_s12 = scalar_lea.vmem %s36_s25, 1024  ;;  %p585_p4 = scmp.lt.s32.totalorder %s36_s25, %s36_s25 }
   0xa   :  { %p581_p3 = scmp.ne.s32.totalorder %s36_s25, %s580_s12  ;;  %p586_p5 = scmp.lt.s32.totalorder %s580_s12, %s580_s12 }
   0xc   :  { %p587_p6 = por %p586_p5, %p585_p4 }
   0xe   :  { %p588_p7 = pnand %p587_p6, %p581_p3 }
  0x10   :  { %591 = shalt.err (!%p588_p7)
}
  0x11   :  { %s642_s13 = smov 64   ;;  %s643_s14 = smov 4  }
  0x12   :  { %41 = dma.hbm_to_vmem [thread:$0]  %s793_s3, 1024, %s36_s25, [#allocation7], %s642_s13, %s642_s13, %s643_s14  }
  0x13   :  { %s592_s19 = scalar_lea.hbm %s791_s1, 1024 }
  0x14   :  { %p593_p8 = scmp.ne.s32.totalorder %s791_s1, %s592_s19  ;;  %p596_p9 = scmp.lt.u32.totalorder %s592_s19, %s791_s1 }
  0x16   :  { %p598_p10 = pnand %p596_p9, %p593_p8 }
  0x18   :  { %601 = shalt.err (!%p598_p10)
}
  0x19   :  { %s602_s24 = scalar_lea.vmem %s687_s27, 1024  ;;  %p607_p12 = scmp.lt.s32.totalorder %s687_s27, %s687_s27 }
  0x1a   :  { %p603_p11 = scmp.ne.s32.totalorder %s687_s27, %s602_s24  ;;  %p608_p13 = scmp.lt.s32.totalorder %s602_s24, %s602_s24 }
  0x1c   :  { %p609_p0 = por %p608_p13, %p607_p12 }
  0x1e   :  { %p610_p1 = pnand %p609_p0, %p603_p11 }
  0x20   :  { %613 = shalt.err (!%p610_p1)
}
  0x21   :  { %27 = dma.hbm_to_vmem [thread:$0]  %s791_s1, 1024, %s687_s27, [#allocation5], %s642_s13, %s642_s13, %s643_s14  }
  0x22   :  { %s644_s26 = smov [#allocation8]   ;;  %s614_s8 = scalar_lea.hbm %s795_s5, 1024 }
  0x23   :  { %s49_s28 = sshll.u32 %s644_s26, 4  ;;  %p615_p2 = scmp.ne.s32.totalorder %s795_s5, %s614_s8  ;;  %s50_s28 = int_to_ptr.vmem [resolvable:$true] %s49_s28 }
  0x24   :  { %p618_p3 = scmp.lt.u32.totalorder %s614_s8, %s795_s5 }
  0x26   :  { %p620_p4 = pnand %p618_p3, %p615_p2 }
  0x28   :  { %623 = shalt.err (!%p620_p4)
}
  0x29   :  { %s624_s15 = scalar_lea.vmem %s50_s28, 1024  ;;  %p629_p6 = scmp.lt.s32.totalorder %s50_s28, %s50_s28 }
  0x2a   :  { %p625_p5 = scmp.ne.s32.totalorder %s50_s28, %s624_s15  ;;  %p630_p7 = scmp.lt.s32.totalorder %s624_s15, %s624_s15 }
  0x2c   :  { %p631_p8 = por %p630_p7, %p629_p6 }
  0x2e   :  { %p632_p9 = pnand %p631_p8, %p625_p5 }
  0x30   :  { %635 = shalt.err (!%p632_p9)
}
  0x31   :  { %55 = dma.hbm_to_vmem [thread:$0]  %s795_s5, 1024, %s50_s28, [#allocation7], %s642_s13, %s642_s13, %s643_s14  }
  0x32   :  { %636 = dma.done.wait [#allocation5], 1024  }
  0x33   :  { %637 = vsyncadd [#allocation5], 4294966272 }
  0x34   :  { %638 = dma.done.wait [#allocation7], 2048  }
  0x35   :  { %639 = vsyncadd [#allocation7], 4294965248  ;;  %v645_v0 = vmov 0.0   ;;  %vm646_vm0 = vmmov 0   ;;  %v546_v1 = vld [vmem:[#allocation4] sm:$0xff]   ;;  %v547_v2 = vld [vmem:[#allocation4 + $0x8] sm:$0xff]  }
  0x36   :  { %479 = vmatprep.subr.bf16.mxu0 %v645_v0  ;;  %495 = vmatprep.mubr.msk.bf16.mxu0 %vm646_vm0, %v645_v0  ;;  %v548_v3 = vld [vmem:[#allocation4 + $0x10] sm:$0xff]   ;;  %v554_v4 = vld [vmem:[#allocation6] sm:$0xff]   ;;  %v549_v5 = vld [vmem:[#allocation4 + $0x18] sm:$0xff]  }
  0x37   :  { %499 = vmatprep.subr.bf16.mxu1 %v645_v0  ;;  %515 = vmatprep.mubr.msk.bf16.mxu1 %vm646_vm0, %v645_v0  ;;  %v555_v6 = vld [vmem:[#allocation6 + $0x8] sm:$0xff]   ;;  %v550_v7 = vld [vmem:[#allocation4 + $0x20] sm:$0xff]   ;;  %v556_v8 = vld [vmem:[#allocation6 + $0x10] sm:$0xff]  }
  0x38   :  { %480 = vmatpush3.bf16.msra.mxu0 %v546_v1  ;;  %500 = vmatpush3.bf16.msra.mxu1 %v554_v4  ;;  %v551_v9 = vld [vmem:[#allocation4 + $0x28] sm:$0xff]   ;;  %v557_v10 = vld [vmem:[#allocation6 + $0x18] sm:$0xff]   ;;  %v552_v11 = vld [vmem:[#allocation4 + $0x30] sm:$0xff]  }
  0x39   :  { %481 = vmatprep.subr.bf16.mxu0 %v645_v0  ;;  %501 = vmatprep.subr.bf16.mxu1 %v645_v0  ;;  %v558_v12 = vld [vmem:[#allocation6 + $0x20] sm:$0xff]   ;;  %v553_v13 = vld [vmem:[#allocation4 + $0x38] sm:$0xff]   ;;  %v69_v15 = vld [vmem:[%s790_s0 + $0x8] sm:$0xff] }
  0x3a   :  { %v68_v14 = vld [vmem:[%s790_s0] sm:$0xff]  ;;  %v559_v16 = vld [vmem:[#allocation6 + $0x28] sm:$0xff]   ;;  %v560_v18 = vld [vmem:[#allocation6 + $0x30] sm:$0xff]  }
  0x3b   :  { %v70_v17 = vpack.c.bf16 %v69_v15, %v68_v14  ;;  %v561_v19 = vld [vmem:[#allocation6 + $0x38] sm:$0xff]   ;;  %v562_v20 = vld [vmem:[#allocation8] sm:$0xff]   ;;  %v563_v21 = vld [vmem:[#allocation8 + $0x8] sm:$0xff]  }
  0x3c   :  { %482 = vmatpush3.bf16.msra.mxu0 %v547_v2  ;;  %502 = vmatpush3.bf16.msra.mxu1 %v555_v6  ;;  %v564_v22 = vld [vmem:[#allocation8 + $0x10] sm:$0xff]   ;;  %v565_v23 = vld [vmem:[#allocation8 + $0x18] sm:$0xff]   ;;  %v566_v24 = vld [vmem:[#allocation8 + $0x20] sm:$0xff]  }
  0x3d   :  { %483 = vmatprep.subr.bf16.mxu0 %v645_v0  ;;  %503 = vmatprep.subr.bf16.mxu1 %v645_v0  ;;  %v567_v25 = vld [vmem:[#allocation8 + $0x28] sm:$0xff]   ;;  %v425_v26 = vld [vmem:[%s792_s2] ss:$0 sm:$0xff]  ;;  %v568_v36 = vld [vmem:[#allocation8 + $0x30] sm:$0xff]  }
  0x3e   :  { %v569_v37 = vld [vmem:[#allocation8 + $0x38] sm:$0xff]   ;;  %v434_v38 = vld [vmem:[%s794_s4] ss:$0 sm:$0xff] }
  0x3f   :  { %v443_v48 = vld [vmem:[%s796_s6] ss:$0 sm:$0xff] }
  0x40   :  { %484 = vmatpush3.bf16.msra.mxu0 %v548_v3  ;;  %504 = vmatpush3.bf16.msra.mxu1 %v556_v8 }
  0x41   :  { %485 = vmatprep.subr.bf16.mxu0 %v645_v0  ;;  %505 = vmatprep.subr.bf16.mxu1 %v645_v0 }
  0x44   :  { %486 = vmatpush3.bf16.msra.mxu0 %v549_v5  ;;  %506 = vmatpush3.bf16.msra.mxu1 %v557_v10 }
  0x45   :  { %487 = vmatprep.subr.bf16.mxu0 %v645_v0  ;;  %507 = vmatprep.subr.bf16.mxu1 %v645_v0 }
  0x48   :  { %488 = vmatpush3.bf16.msra.mxu0 %v550_v7  ;;  %508 = vmatpush3.bf16.msra.mxu1 %v558_v12 }
  0x49   :  { %489 = vmatprep.subr.bf16.mxu0 %v645_v0  ;;  %509 = vmatprep.subr.bf16.mxu1 %v645_v0 }
  0x4c   :  { %490 = vmatpush3.bf16.msra.mxu0 %v551_v9  ;;  %510 = vmatpush3.bf16.msra.mxu1 %v559_v16 }
  0x4d   :  { %491 = vmatprep.subr.bf16.mxu0 %v645_v0  ;;  %511 = vmatprep.subr.bf16.mxu1 %v645_v0 }
  0x50   :  { %492 = vmatpush3.bf16.msra.mxu0 %v552_v11  ;;  %512 = vmatpush3.bf16.msra.mxu1 %v560_v18 }
  0x51   :  { %493 = vmatprep.subr.bf16.mxu0 %v645_v0  ;;  %513 = vmatprep.subr.bf16.mxu1 %v645_v0 }
  0x54   :  { %494 = vmatpush3.bf16.msra.mxu0 %v553_v13  ;;  %514 = vmatpush3.bf16.msra.mxu1 %v561_v19 }
  0x55   :  { %519 = vmatprep.subr.bf16.mxu0 %v645_v0 }
  0x57   :  { %496 = vmatmul.mubr.bf16.vlgmr.msra.gmra.mrb[0].mxu0 %v70_v17 }
  0x58   :  { %535 = vmatprep.mubr.msk.bf16.mxu0 %vm646_vm0, %v645_v0  ;;  %520 = vmatpush3.bf16.msra.mxu0 %v562_v20 }
  0x59   :  { %521 = vmatprep.subr.bf16.mxu0 %v645_v0 }
  0x5c   :  { %522 = vmatpush3.bf16.msra.mxu0 %v563_v21 }
  0x5d   :  { %523 = vmatprep.subr.bf16.mxu0 %v645_v0 }
  0x60   :  { %524 = vmatpush3.bf16.msra.mxu0 %v564_v22 }
  0x61   :  { %525 = vmatprep.subr.bf16.mxu0 %v645_v0 }
  0x64   :  { %526 = vmatpush3.bf16.msra.mxu0 %v565_v23 }
  0x65   :  { %527 = vmatprep.subr.bf16.mxu0 %v645_v0 }
  0x68   :  { %528 = vmatpush3.bf16.msra.mxu0 %v566_v24 }
  0x69   :  { %529 = vmatprep.subr.bf16.mxu0 %v645_v0 }
  0x6c   :  { %530 = vmatpush3.bf16.msra.mxu0 %v567_v25 }
  0x6d   :  { %531 = vmatprep.subr.bf16.mxu0 %v645_v0 }
  0x70   :  { %532 = vmatpush3.bf16.msra.mxu0 %v568_v36 }
  0x71   :  { %533 = vmatprep.subr.bf16.mxu0 %v645_v0 }
  0x74   :  { %534 = vmatpush3.bf16.msra.mxu0 %v569_v37 }
 0x12a   :  { %v176_v27 = vpop.f32.mrb[0].mxu0 }
 0x12b   :  { %v177_v28 = vadd.f32 %v425_v26, %v176_v27  ;;  %v497_v29 = vpop.f32.mrb[1].mxu0 }
 0x12c   :  { %v179_v30 = vpop.f32.mrb[2].mxu0 }
 0x12d   :  { %v180_v31 = vadd.f32 %v425_v26, %v179_v30  ;;  %v498_v32 = vpop.f32.mrb[3].mxu0  ;;  %v183_v33 = vmax.f32 %v177_v28, 0.0 }
 0x12f   :  { %v184_v34 = vmax.f32 %v180_v31, 0.0 }
 0x131   :  { %v185_v35 = vpack.c.bf16 %v184_v34, %v183_v33 }
 0x133   :  { %516 = vmatmul.mubr.bf16.vlgmr.msra.gmra.mrb[0].mxu1 %v185_v35 }
 0x206   :  { %v293_v39 = vpop.f32.mrb[0].mxu1 }
 0x207   :  { %v294_v40 = vadd.f32 %v434_v38, %v293_v39  ;;  %v517_v41 = vpop.f32.mrb[1].mxu1 }
 0x208   :  { %v296_v42 = vpop.f32.mrb[2].mxu1 }
 0x209   :  { %v297_v43 = vadd.f32 %v434_v38, %v296_v42  ;;  %v518_v44 = vpop.f32.mrb[3].mxu1  ;;  %v300_v45 = vmax.f32 %v294_v40, 0.0 }
 0x20b   :  { %v301_v46 = vmax.f32 %v297_v43, 0.0 }
 0x20d   :  { %v302_v47 = vpack.c.bf16 %v301_v46, %v300_v45 }
 0x20f   :  { %536 = vmatmul.mubr.bf16.vlgmr.msra.gmra.mrb[4].mxu0 %v302_v47 }
 0x2e2   :  { %v410_v49 = vpop.f32.mrb[4].mxu0 }
 0x2e3   :  { %v411_v50 = vadd.f32 %v443_v48, %v410_v49  ;;  %v537_v51 = vpop.f32.mrb[5].mxu0 }
 0x2e4   :  { %v413_v52 = vpop.f32.mrb[6].mxu0 }
 0x2e5   :  { %417 = vst [vmem:[%s797_s7] sm:$0xff] %v411_v50  ;;  %v414_v53 = vadd.f32 %v443_v48, %v413_v52  ;;  %v538_v54 = vpop.f32.mrb[7].mxu0 }
 0x2e7   :  { %418 = vst [vmem:[%s797_s7 + $0x8] sm:$0xff] %v414_v53 }
 0x2e8   :  { %423 = vsyncpa [#allocation5], 1 }
 0x2e9   :  { %424 = vsyncpa [#allocation7], 1 }

</bundles_post_ra>
